<compile_context>
chip_gen: v7x
topology: tpu7x:2x2x1
jax: 0.10.0
libtpu: 0.0.40
codegen_flags: <defaults>
</compile_context>

<pallas_src>
import functools

import jax
import jax.numpy as jnp
from jax.experimental import pallas as pl
from jax.experimental.pallas import tpu as pltpu


def simplenet_kernel(x_ref, w1_ref, b1_ref, w2_ref, b2_ref, o_ref):
    # bf16 casts inside the kernel (cheap VPU work hidden under the MXU).
    x = x_ref[...].astype(jnp.bfloat16)
    w1 = w1_ref[...].astype(jnp.bfloat16)
    # layer1: bf16 x bf16 matmul on the MXU, f32 accumulation.
    h = jnp.dot(x, w1, preferred_element_type=jnp.float32)
    # bias + ReLU in f32 on the VPU.
    h = jnp.maximum(h + b1_ref[...], 0.0)
    # layer2: downcast only for the second MXU pass, f32 accumulation.
    w2 = w2_ref[...].astype(jnp.bfloat16)
    out = jnp.dot(h.astype(jnp.bfloat16), w2, preferred_element_type=jnp.float32)
    o_ref[...] = (out + b2_ref[...]).astype(o_ref.dtype)


def _round_up(n, m):
    return ((n + m - 1) // m) * m


@functools.partial(jax.jit, static_argnames=("max_tile_b",))
def simplenet_forward(x, w1, b1, w2, b2, *, max_tile_b=1024):
    """Fused MLP forward. Pads only the batch (to the tile's sublane multiple),
    runs a 1-D batch-parallel grid, weights/biases stay VMEM-resident."""
    B, in_f = x.shape
    hidden = w1.shape[1]
    out_f = w2.shape[1]

    # tile_b ~= ceil(B/2) rounded to 8 and capped: >=2 grid steps whenever
    # B >= 16 (so v7x megacore can split the batch), minimal dead-row padding,
    # still large tiles for big batches on v5e/v6e.
    tile_b = max(8, min(max_tile_b, _round_up(pl.cdiv(B, 2), 8)))
    b_p = _round_up(B, tile_b)
    xp = x if b_p == B else jnp.pad(x, ((0, b_p - B), (0, 0)))

    grid = (b_p // tile_b,)

    # Advisory cost estimate from the TRUE (unpadded) problem size.
    flops = 2 * B * in_f * hidden + 2 * B * hidden * out_f
    bytes_accessed = 4 * (x.size + w1.size + b1.size + w2.size + b2.size
                          + B * out_f)

    out = pl.pallas_call(
        simplenet_kernel,
        out_shape=jax.ShapeDtypeStruct((b_p, out_f), jnp.float32),
        grid=grid,
        in_specs=[
            # Batch tile marches along the grid axis.
            pl.BlockSpec((tile_b, in_f), lambda i: (i, 0)),
            # Weights / biases: constant index_map -> VMEM-resident, no re-DMA.
            pl.BlockSpec((in_f, hidden), lambda i: (0, 0)),
            pl.BlockSpec((1, hidden), lambda i: (0, 0)),
            pl.BlockSpec((hidden, out_f), lambda i: (0, 0)),
            pl.BlockSpec((1, out_f), lambda i: (0, 0)),
        ],
        out_specs=pl.BlockSpec((tile_b, out_f), lambda i: (i, 0)),
        compiler_params=pltpu.CompilerParams(
            dimension_semantics=("parallel",)),   # megacore-shard the batch
        cost_estimate=pl.CostEstimate(
            flops=flops, transcendentals=0, bytes_accessed=bytes_accessed),
    )(xp, w1, b1, w2, b2)

    # Drop batch padding only when it exists (no-op for aligned batches).
    return out if b_p == B else out[:B]


def simplenet_reference_f32(x, w1, b1, w2, b2):
    h = jnp.maximum(x @ w1 + b1, 0.0)
    return h @ w2 + b2


def simplenet_reference_bf16(x, w1, b1, w2, b2):
    # Matches the kernel's numerics: bf16 operands, f32 accumulation.
    h = jnp.dot(x.astype(jnp.bfloat16), w1.astype(jnp.bfloat16),
                preferred_element_type=jnp.float32) + b1
    h = jnp.maximum(h, 0.0)
    return jnp.dot(h.astype(jnp.bfloat16), w2.astype(jnp.bfloat16),
                   preferred_element_type=jnp.float32) + b2


if __name__ == "__main__":
    # Module-implied shapes: input_size, hidden_size, output_size.
    B, input_size, hidden_size, output_size = 128, 32, 64, 16

    key = jax.random.PRNGKey(0)
    kx, kw1, kb1, kw2, kb2 = jax.random.split(key, 5)

    x = jax.random.normal(kx, (B, input_size), dtype=jnp.float32)

    # Deterministic parameter init (uniform +-1/sqrt(fan_in), like nn.Linear).
    s1 = 1.0 / jnp.sqrt(jnp.float32(input_size))
    s2 = 1.0 / jnp.sqrt(jnp.float32(hidden_size))
    w1 = jax.random.uniform(kw1, (input_size, hidden_size), jnp.float32, -s1, s1)
    b1 = jax.random.uniform(kb1, (1, hidden_size), jnp.float32, -s1, s1)
    w2 = jax.random.uniform(kw2, (hidden_size, output_size), jnp.float32, -s2, s2)
    b2 = jax.random.uniform(kb2, (1, output_size), jnp.float32, -s2, s2)

    out = simplenet_forward(x, w1, b1, w2, b2)
    jax.block_until_ready(out)
    assert out.shape == (B, output_size)

    # Check vs. a numerics-matched (bf16 operand / f32 accum) reference.
    # Tolerance loosened slightly: MXU accumulation order differs per chip
    # generation (v5e 128x128 passes vs v6e/v7x 256x256).
    ref_bf16 = simplenet_reference_bf16(x, w1, b1, w2, b2)
    assert jnp.allclose(out, ref_bf16, atol=1e-2, rtol=1e-2)

    # Sanity check vs. the full-f32 reference (bf16 rounding tolerance).
    ref_f32 = simplenet_reference_f32(x, w1, b1, w2, b2)
    assert jnp.allclose(out, ref_f32, atol=5e-2, rtol=5e-2)

    print("KERNEL_OK")
</pallas_src>

<mosaic_0001>
module attributes {stable_mosaic.version = 11 : i64} {
  func.func @simplenet_kernel(%arg0: i32, %arg1: memref<64x32xf32, #tpu.memory_space<vmem>>, %arg2: memref<32x64xf32, #tpu.memory_space<vmem>>, %arg3: memref<1x64xf32, #tpu.memory_space<vmem>>, %arg4: memref<64x16xf32, #tpu.memory_space<vmem>>, %arg5: memref<1x16xf32, #tpu.memory_space<vmem>>, %arg6: memref<64x16xf32, #tpu.memory_space<vmem>>) attributes {dimension_semantics = [#tpu.dimension_semantics<parallel>], iteration_bounds = array<i64: 2>, scalar_prefetch = 0 : i64, scratch_operands = 0 : i64, tpu.core_type = #tpu.core_type<tc>, window_params = [{transform_indices = @transform_0, window_bounds = array<i64: 64, 32>}, {pipeline_mode = #tpu.pipeline_mode<synchronous>, transform_indices = @transform_1, window_bounds = array<i64: 32, 64>}, {pipeline_mode = #tpu.pipeline_mode<synchronous>, transform_indices = @transform_2, window_bounds = array<i64: 1, 64>}, {pipeline_mode = #tpu.pipeline_mode<synchronous>, transform_indices = @transform_3, window_bounds = array<i64: 64, 16>}, {pipeline_mode = #tpu.pipeline_mode<synchronous>, transform_indices = @transform_4, window_bounds = array<i64: 1, 16>}, {transform_indices = @transform_5, window_bounds = array<i64: 64, 16>}]} {
    %c0 = arith.constant 0 : index
    %c0_0 = arith.constant 0 : index
    %0 = vector.load %arg1[%c0, %c0_0] : memref<64x32xf32, #tpu.memory_space<vmem>>, vector<64x32xf32>
    %1 = arith.truncf %0 : vector<64x32xf32> to vector<64x32xbf16>
    %c0_1 = arith.constant 0 : index
    %c0_2 = arith.constant 0 : index
    %2 = vector.load %arg2[%c0_1, %c0_2] : memref<32x64xf32, #tpu.memory_space<vmem>>, vector<32x64xf32>
    %3 = arith.truncf %2 : vector<32x64xf32> to vector<32x64xbf16>
    %cst = arith.constant dense<0.000000e+00> : vector<64x64xf32>
    %4 = tpu.matmul %1, %3, %cst {dimension_numbers = #tpu.dot_dimension_numbers<[1], [0], [0], [1], [0, 0, 1, 1], [], []>} : vector<64x32xbf16>, vector<32x64xbf16>, vector<64x64xf32> -> vector<64x64xf32>
    %c0_3 = arith.constant 0 : index
    %c0_4 = arith.constant 0 : index
    %5 = vector.load %arg3[%c0_3, %c0_4] : memref<1x64xf32, #tpu.memory_space<vmem>>, vector<1x64xf32>
    %6 = vector.broadcast %5 : vector<1x64xf32> to vector<64x64xf32>
    %7 = arith.addf %4, %6 : vector<64x64xf32>
    %cst_5 = arith.constant 0.000000e+00 : f32
    %8 = vector.broadcast %cst_5 : f32 to vector<64x64xf32>
    %9 = arith.maximumf %7, %8 : vector<64x64xf32>
    %c0_6 = arith.constant 0 : index
    %c0_7 = arith.constant 0 : index
    %10 = vector.load %arg4[%c0_6, %c0_7] : memref<64x16xf32, #tpu.memory_space<vmem>>, vector<64x16xf32>
    %11 = arith.truncf %10 : vector<64x16xf32> to vector<64x16xbf16>
    %12 = arith.truncf %9 : vector<64x64xf32> to vector<64x64xbf16>
    %cst_8 = arith.constant dense<0.000000e+00> : vector<64x16xf32>
    %13 = tpu.matmul %12, %11, %cst_8 {dimension_numbers = #tpu.dot_dimension_numbers<[1], [0], [0], [1], [0, 0, 1, 1], [], []>} : vector<64x64xbf16>, vector<64x16xbf16>, vector<64x16xf32> -> vector<64x16xf32>
    %c0_9 = arith.constant 0 : index
    %c0_10 = arith.constant 0 : index
    %14 = vector.load %arg5[%c0_9, %c0_10] : memref<1x16xf32, #tpu.memory_space<vmem>>, vector<1x16xf32>
    %15 = vector.broadcast %14 : vector<1x16xf32> to vector<64x16xf32>
    %16 = arith.addf %13, %15 : vector<64x16xf32>
    %c0_11 = arith.constant 0 : index
    %c0_12 = arith.constant 0 : index
    %17 = vector.load %arg6[%c0_11, %c0_12] : memref<64x16xf32, #tpu.memory_space<vmem>>, vector<64x16xf32>
    tpu.vector_store %arg6[%c0_11, %c0_12], %16 {strides = array<i32>} : memref<64x16xf32, #tpu.memory_space<vmem>>, vector<64x16xf32>,
    return
  }
  func.func @transform_0(%arg0: i32) -> (i32, i32) {
    %c0_i32 = arith.constant 0 : i32
    %c0_i32_0 = arith.constant 0 : i32
    return %arg0, %c0_i32 : i32, i32
  }
  func.func @transform_1(%arg0: i32) -> (i32, i32) {
    %c0_i32 = arith.constant 0 : i32
    %c0_i32_0 = arith.constant 0 : i32
    %c0_i32_1 = arith.constant 0 : i32
    return %c0_i32, %c0_i32_0 : i32, i32
  }
  func.func @transform_2(%arg0: i32) -> (i32, i32) {
    %c0_i32 = arith.constant 0 : i32
    %c0_i32_0 = arith.constant 0 : i32
    %c0_i32_1 = arith.constant 0 : i32
    return %c0_i32, %c0_i32_0 : i32, i32
  }
  func.func @transform_3(%arg0: i32) -> (i32, i32) {
    %c0_i32 = arith.constant 0 : i32
    %c0_i32_0 = arith.constant 0 : i32
    %c0_i32_1 = arith.constant 0 : i32
    return %c0_i32, %c0_i32_0 : i32, i32
  }
  func.func @transform_4(%arg0: i32) -> (i32, i32) {
    %c0_i32 = arith.constant 0 : i32
    %c0_i32_0 = arith.constant 0 : i32
    %c0_i32_1 = arith.constant 0 : i32
    return %c0_i32, %c0_i32_0 : i32, i32
  }
  func.func @transform_5(%arg0: i32) -> (i32, i32) {
    %c0_i32 = arith.constant 0 : i32
    %c0_i32_0 = arith.constant 0 : i32
    return %arg0, %c0_i32 : i32, i32
  }
}

</mosaic_0001>

<bundles_post_ra>
// kernel: simplenet_forward.1
= control target key start
LH: loop header
LB: loop body
LE: loop exit
PB: predicated region body
PF: predicated region fallthrough
CT: control target
= control target key end

     0   :  { %s615_s18 = smov 0   ;;  %s697_s0 = inlined_call_operand.vmem [shape: f32[128,32], index: 0, kind: input, shape index: {}]   ;;  %s698_s1 = inlined_call_operand.vmem [shape: f32[32,64], index: 1, kind: input, shape index: {}]   ;;  %s699_s2 = inlined_call_operand.vmem [shape: f32[1,64], index: 2, kind: input, shape index: {}]   ;;  %s700_s3 = inlined_call_operand.vmem [shape: f32[64,16], index: 3, kind: input, shape index: {}]   ;;  %s701_s4 = inlined_call_operand.vmem [shape: f32[1,16], index: 4, kind: input, shape index: {}]   ;;  %s702_s5 = inlined_call_operand.vmem [shape: f32[128,16], index: 5, kind: output, shape index: {}]  }
   0x1 LB: > { %s506_s19 = sadd.s32 4294967295, %s583_s18   ;;  %p510_p0 = scmp.ge.s32.totalorder %s583_s18, 1  ;;  %s583_s18 = sphi %s615_s18, %s15_s18  }
   0x2   : > { %p188_p1 = scmp.lt.s32.totalorder %s583_s18, 3 }
   0x4   : > { %p189_p2 = pnand %p510_p0, %p188_p1 }
   0x5   : > { %v241_v0 = vld [vmem:[%s698_s1] sm:$0xff] (!%p189_p2)  ;;  %v242_v1 = vld [vmem:[%s698_s1 + $0x8] sm:$0xff] (!%p189_p2)  ;;  %v243_v2 = vld [vmem:[%s698_s1 + $0x10] sm:$0xff] (!%p189_p2)  ;;  %s511_s26 = sshll.u32 (!%p189_p2), %s506_s19, 3  ;;  %vm254_vm0 = vcmask (!%p189_p2), 261120   ;;  %vm363_vm1 = vcmask (!%p189_p2), 523264  }
   0x6   : > { %192 = sbr.rel (%p189_p2) target bundleno = 468 (0x1d4), region = 40  ;;  %v245_v3 = vpack.c.bf16 (!%p189_p2), %v242_v1, %v241_v0  ;;  %v244_v4 = vld [vmem:[%s698_s1 + $0x18] sm:$0xff] (!%p189_p2)  ;;  %p217_p3 = scmp.lt.s32.totalorder (!%p189_p2), %s511_s26, 15  ;;  %v340_v5 = vld [vmem:[%s700_s3] sm:$0xff] (!%p189_p2)  ;;  %v341_v6 = vld [vmem:[%s700_s3 + $0x8] sm:$0xff] (!%p189_p2)  ;;  %vm441_vm2 = vcmask (!%p189_p2), 130048  }
   0x7   : > { %v246_v7 = vpack.c.bf16 (!%p189_p2), %v244_v4, %v243_v2  ;;  %v348_v8 = vpack.c.bf16 (!%p189_p2), %v341_v6, %v340_v5  ;;  %v342_v9 = vld [vmem:[%s700_s3 + $0x10] sm:$0xff] (!%p189_p2)  ;;  %v343_v10 = vld [vmem:[%s700_s3 + $0x18] sm:$0xff] (!%p189_p2)  ;;  %v344_v24 = vld [vmem:[%s700_s3 + $0x20] sm:$0xff] (!%p189_p2) }
   0x8   : > { %541 = vmatprep.subr.bf16.mxu0 (!%p189_p2), %v245_v3  ;;  %v349_v11 = vpack.c.bf16 (!%p189_p2), %v343_v10, %v342_v9  ;;  %v345_v25 = vld [vmem:[%s700_s3 + $0x28] sm:$0xff] (!%p189_p2)  ;;  %v346_v27 = vld [vmem:[%s700_s3 + $0x30] sm:$0xff] (!%p189_p2)  ;;  %v347_v28 = vld [vmem:[%s700_s3 + $0x38] sm:$0xff] (!%p189_p2) }
   0x9   : > { %542 = vmatpush3.bf16.msra.mxu0 (!%p189_p2), %v245_v3  ;;  %553 = vmatprep.subr.bf16.mxu1 (!%p189_p2), %v348_v8  ;;  %v350_v26 = vpack.c.bf16 (!%p189_p2), %v345_v25, %v344_v24  ;;  %v351_v29 = vpack.c.bf16 (!%p189_p2), %v347_v28, %v346_v27  ;;  %v515_v30 = vld [vmem:[%s699_s2] ss:$0 sm:$0xff] (!%p189_p2) }
   0xa   : > { %543 = vmatprep.subr.bf16.mxu0 (!%p189_p2), %v246_v7  ;;  %554 = vmatpush3.bf16.msra.mxu1 (!%p189_p2), %v348_v8  ;;  %v520_v59 = vld [vmem:[%s701_s4] ss:$0 sm:$0xff] (!%p189_p2) }
   0xb   : > { %555 = vmatprep.subr.bf16.mxu1 (!%p189_p2), %v349_v11 }
   0xd   : > { %s704_s26 = smov (!%p217_p3, %s511_s26), 15  ;;  %544 = vmatpush3.bf16.msra.mxu0 %v246_v7 }
   0xe   : > { %s512_s12 = sshll.u32 %s704_s26, 3  ;;  %556 = vmatpush3.bf16.msra.mxu1 %v349_v11 }
   0xf   : > { %s220_s15 = scalar_lea.vmem %s697_s0, %s512_s12  ;;  %557 = vmatprep.subr.bf16.mxu1 %v350_v26  ;;  %s226_s7 = scalar_lea.vmem %s702_s5, %s512_s12 }
  0x10   : > { %v229_v12 = vld [vmem:[%s220_s15] sm:$0xff]  ;;  %v230_v13 = vld [vmem:[%s220_s15 + $0x8] sm:$0xff]  ;;  %v231_v14 = vld [vmem:[%s220_s15 + $0x10] sm:$0xff] }
  0x11   : > { %v237_v15 = vpack.c.bf16 %v230_v13, %v229_v12  ;;  %v232_v16 = vld [vmem:[%s220_s15 + $0x18] sm:$0xff]  ;;  %v233_v17 = vld [vmem:[%s220_s15 + $0x20] sm:$0xff]  ;;  %v234_v18 = vld [vmem:[%s220_s15 + $0x28] sm:$0xff] }
  0x12   : > { %v238_v19 = vpack.c.bf16 %v232_v16, %v231_v14  ;;  %v239_v20 = vpack.c.bf16 %v234_v18, %v233_v17  ;;  %v235_v21 = vld [vmem:[%s220_s15 + $0x30] sm:$0xff]  ;;  %v236_v22 = vld [vmem:[%s220_s15 + $0x38] sm:$0xff]  ;;  %558 = vmatpush3.bf16.msra.mxu1 %v350_v26 }
  0x13   : > { %545 = vmatprep.mubr.msk.bf16.mxu0 %vm254_vm0, %v237_v15  ;;  %v240_v23 = vpack.c.bf16 %v236_v22, %v235_v21  ;;  %559 = vmatprep.subr.bf16.mxu1 %v351_v29 }
  0x14   : > { %546 = vmatmul.mubr.msk.bf16.vlgmr.msra.gmra.mrb[0].mxu0 %vm254_vm0, %v238_v19 }
  0x15   : > { %549 = vmatprep.mubr.msk.bf16.mxu0 %vm254_vm0, %v239_v20 }
  0x16   : > { %560 = vmatpush3.bf16.msra.mxu1 %v351_v29 }
  0x1c   : > { %550 = vmatmul.mubr.msk.bf16.gmra.mrb[4].mxu0 %vm254_vm0, %v240_v23 }
  0xe7   : > { %v547_v31 = vpop.f32.mrb[0].mxu0 }
  0xe8   : > { %v310_v32 = vadd.f32 %v547_v31, %v515_v30  ;;  %v301_v33 = vpop.f32.mrb[1].mxu0 }
  0xe9   : > { %v302_v34 = vadd.f32 %v515_v30, %v301_v33  ;;  %v548_v35 = vpop.f32.mrb[2].mxu0 }
  0xea   : > { %v313_v36 = vadd.f32 %v548_v35, %v515_v30  ;;  %v304_v37 = vpop.f32.mrb[3].mxu0  ;;  %v334_v39 = vmax.f32 %v310_v32, 0.0 }
  0xeb   : > { %v305_v38 = vadd.f32 %v515_v30, %v304_v37  ;;  %v332_v41 = vmax.f32 %v302_v34, 0.0 }
  0xec   : > { %v335_v40 = vmax.f32 %v313_v36, 0.0 }
  0xed   : > { %v333_v42 = vmax.f32 %v305_v38, 0.0 }
  0xee   : > { %v353_v43 = vpack.c.bf16 %v335_v40, %v334_v39 }
  0xef   : > { %v551_v44 = vpop.f32.mrb[4].mxu0  ;;  %v352_v45 = vpack.c.bf16 %v333_v42, %v332_v41 }
  0xf0   : > { %v326_v46 = vadd.f32 %v551_v44, %v515_v30  ;;  %v317_v47 = vpop.f32.mrb[5].mxu0 }
  0xf1   : > { %v318_v48 = vadd.f32 %v515_v30, %v317_v47  ;;  %v552_v49 = vpop.f32.mrb[6].mxu0  ;;  %561 = vmatprep.mubr.msk.bf16.mxu1 %vm363_vm1, %v352_v45 }
  0xf2   : > { %v329_v50 = vadd.f32 %v552_v49, %v515_v30  ;;  %v320_v51 = vpop.f32.mrb[7].mxu0  ;;  %562 = vmatmul.mubr.msk.bf16.vlgmr.msra.gmra.mrb[0].mxu1 %vm363_vm1, %v353_v43  ;;  %v338_v53 = vmax.f32 %v326_v46, 0.0 }
  0xf3   : > { %v321_v52 = vadd.f32 %v515_v30, %v320_v51  ;;  %v336_v55 = vmax.f32 %v318_v48, 0.0 }
  0xf4   : > { %v339_v54 = vmax.f32 %v329_v50, 0.0 }
  0xf5   : > { %v337_v56 = vmax.f32 %v321_v52, 0.0 }
  0xf6   : > { %v355_v57 = vpack.c.bf16 %v339_v54, %v338_v53 }
  0xf7   : > { %v354_v58 = vpack.c.bf16 %v337_v56, %v336_v55 }
  0xf9   : > { %565 = vmatprep.mubr.msk.bf16.mxu1 %vm363_vm1, %v354_v58 }
  0xfa   : > { %566 = vmatmul.mubr.msk.bf16.gmra.mrb[4].mxu1 %vm363_vm1, %v355_v57 }
 0x1c5   : > { %v563_v60 = vpop.f32.mrb[0].mxu1 }
 0x1c6   : > { %v419_v61 = vadd.f32 %v563_v60, %v520_v59  ;;  %v410_v62 = vpop.f32.mrb[1].mxu1 }
 0x1c7   : > { %v411_v63 = vadd.f32 %v520_v59, %v410_v62  ;;  %v564_v0 = vpop.f32.mrb[2].mxu1 }
 0x1c8   : > { %444 = vst.msk [vmem:[%s226_s7 + $0x10] sm:$0xff] %vm441_vm2, %v419_v61  ;;  %v422_v1 = vadd.f32 %v564_v0, %v520_v59  ;;  %v413_v2 = vpop.f32.mrb[3].mxu1 }
 0x1c9   : > { %442 = vst.msk [vmem:[%s226_s7] sm:$0xff] %vm441_vm2, %v411_v63  ;;  %v414_v3 = vadd.f32 %v520_v59, %v413_v2 }
 0x1ca   : > { %445 = vst.msk [vmem:[%s226_s7 + $0x18] sm:$0xff] %vm441_vm2, %v422_v1 }
 0x1cb   : > { %443 = vst.msk [vmem:[%s226_s7 + $0x8] sm:$0xff] %vm441_vm2, %v414_v3 }
 0x1cd   : > { %v567_v4 = vpop.f32.mrb[4].mxu1 }
 0x1ce   : > { %v435_v5 = vadd.f32 %v567_v4, %v520_v59  ;;  %v426_v6 = vpop.f32.mrb[5].mxu1 }
 0x1cf   : > { %v427_v7 = vadd.f32 %v520_v59, %v426_v6  ;;  %v568_v8 = vpop.f32.mrb[6].mxu1 }
 0x1d0   : > { %448 = vst.msk [vmem:[%s226_s7 + $0x30] sm:$0xff] %vm441_vm2, %v435_v5  ;;  %v438_v9 = vadd.f32 %v568_v8, %v520_v59  ;;  %v429_v10 = vpop.f32.mrb[7].mxu1 }
 0x1d1   : > { %446 = vst.msk [vmem:[%s226_s7 + $0x20] sm:$0xff] %vm441_vm2, %v427_v7  ;;  %v430_v11 = vadd.f32 %v520_v59, %v429_v10 }
 0x1d2   : > { %449 = vst.msk [vmem:[%s226_s7 + $0x38] sm:$0xff] %vm441_vm2, %v438_v9 }
 0x1d3   : > { %447 = vst.msk [vmem:[%s226_s7 + $0x28] sm:$0xff] %vm441_vm2, %v430_v11 }
 0x1d4 PF: > { %s15_s18 = sadd.s32 1, %s583_s18  }
 0x1d5   : > { %p12_p4 = scmp.ge.s32.totalorder %s15_s18, 4  }
 0x1d7   :  { %14 = sbr.rel (!%p12_p4) target bundleno = 1 (0x1), region = 70 }

</bundles_post_ra>
